<compile_context>
chip_gen: v5e
topology: v5e:2x2
jax: 0.10.0
libtpu: 0.0.40
codegen_flags: <defaults>
</compile_context>

<pallas_src>
import jax
import jax.numpy as jnp
from jax.experimental import pallas as pl
from jax.experimental.pallas import tpu as pltpu

LANE = 128


def _round_up(v, m):
    return (v + m - 1) // m * m


def _pad2(a, rows, cols):
    r, c = a.shape
    return jnp.pad(a, ((0, rows - r), (0, cols - c)))


def attention_mil_kernel(x_ref, wfe_ref, bfe_ref, w1_ref, b1_ref, w2_ref,
                         wc_ref, bc_ref, out_ref, m_ref, l_ref, acc_ref):
    n = pl.program_id(1)
    n_last = pl.num_programs(1) - 1

    @pl.when(n == 0)
    def _init():
        m_ref[...] = jnp.full_like(m_ref, -jnp.inf)
        l_ref[...] = jnp.zeros_like(l_ref)
        acc_ref[...] = jnp.zeros_like(acc_ref)

    x = x_ref[...]                                    # (TB, TN, CHWp)
    tb, tn, chwp = x.shape
    x2 = x.reshape(tb * tn, chwp)                     # flat rows -> tall MXU M dim

    # Feature-extractor stand-in: spatial mean folded into wfe (done in the wrapper),
    # so this is one MXU matmul with K = C*H*W.
    feats2 = jnp.dot(x2, wfe_ref[...],
                     preferred_element_type=jnp.float32) + bfe_ref[...]      # (TB*TN, Dp)

    # Attention head: Linear(D,128) -> tanh -> Linear(128,1).
    h2 = jnp.tanh(jnp.dot(feats2, w1_ref[...],
                          preferred_element_type=jnp.float32) + b1_ref[...])  # (TB*TN, Hp)
    # Width-1 output: keep it off the MXU (VPU multiply + lane reduce). The scalar
    # bias b2 is omitted: softmax over tiles is invariant to a constant offset.
    s2 = jnp.sum(h2 * w2_ref[...], axis=-1, keepdims=True)                   # (TB*TN, 1)

    feats3 = feats2.reshape(tb, tn, -1)               # (TB, TN, Dp)
    s3 = s2.reshape(tb, tn, 1)                        # (TB, TN, 1)

    # Online softmax over the tile axis (running max / sum-of-exp / weighted sum).
    m_prev = m_ref[...]                                            # (TB, 1, 1)
    m_new = jnp.maximum(m_prev, jnp.max(s3, axis=1, keepdims=True))
    alpha = jnp.exp(m_prev - m_new)
    p3 = jnp.exp(s3 - m_new)                                       # (TB, TN, 1)
    l_ref[...] = alpha * l_ref[...] + jnp.sum(p3, axis=1, keepdims=True)
    acc_ref[...] = alpha * acc_ref[...] + jnp.sum(p3 * feats3, axis=1, keepdims=True)
    m_ref[...] = m_new

    @pl.when(n == n_last)
    def _finalize():
        attended = (acc_ref[...] / l_ref[...]).reshape(tb, -1)     # (TB, Dp)
        logits = jnp.dot(attended, wc_ref[...],
                         preferred_element_type=jnp.float32) + bc_ref[...]   # (TB, Cp)
        out_ref[...] = logits.astype(out_ref.dtype)


def attention_mil_forward(x, params, *, tile_block=8, compute_dtype=jnp.float32):
    """x: (B, num_tiles, C, H, W) float32 (NCHW per tile, like PyTorch).

    compute_dtype=jnp.bfloat16 halves HBM traffic / VMEM for the streamed x on
    v6e/v7x (f32 accumulation kept via preferred_element_type); default f32 here
    so the demo matches the f32 reference tightly.
    """
    B, N, C, H, W = x.shape
    wfe, bfe, w1, b1, w2, b2, wc, bc = params
    del b2  # softmax over tiles is invariant to a constant score offset
    D = wfe.shape[1]
    HIDDEN = w1.shape[1]
    num_classes = wc.shape[1]
    HW = H * W
    CHW = C * HW

    # Lane-dense (128-padded) working dims.
    Dp = _round_up(D, LANE)
    Hp = _round_up(HIDDEN, LANE)
    Cp = _round_up(num_classes, LANE)
    CHWp = _round_up(CHW, LANE)

    # Tile / batch blocking. Each x block is (TB, TN, CHWp); keep it small enough that
    # 2x (double buffering) fits comfortably in VMEM on all parts (v7x: 64 MiB total).
    TN = min(tile_block, N)
    assert N % TN == 0 and (TN % 8 == 0 or TN == N), (N, TN)
    TB = 8 if (B % 8 == 0) else B
    b_blocks = B // TB
    n_blocks = N // TN

    # Flatten tiles; fold the spatial mean into the FE projection weight.
    xf = x.reshape(B, N, CHW).astype(compute_dtype)
    if CHWp != CHW:
        xf = jnp.pad(xf, ((0, 0), (0, 0), (0, CHWp - CHW)))
    wfe_flat = (jnp.repeat(wfe, HW, axis=0) / HW).astype(compute_dtype)      # (CHW, D)
    wfe_p = _pad2(wfe_flat, CHWp, Dp)
    bfe_p = _pad2(bfe.reshape(1, D).astype(jnp.float32), 1, Dp)
    w1_p = _pad2(w1.astype(jnp.float32), Dp, Hp)
    b1_p = _pad2(b1.reshape(1, HIDDEN).astype(jnp.float32), 1, Hp)
    w2_p = _pad2(w2.reshape(1, HIDDEN).astype(jnp.float32), 1, Hp)           # row vector
    wc_p = _pad2(wc.astype(jnp.float32), Dp, Cp)
    bc_p = _pad2(bc.reshape(1, num_classes).astype(jnp.float32), 1, Cp)

    def resident(shape):
        # Same block every grid step -> weights stay in VMEM across the tile loop.
        return pl.BlockSpec(shape, lambda b, n: (0,) * len(shape))

    out_padded = pl.pallas_call(
        attention_mil_kernel,
        out_shape=jax.ShapeDtypeStruct((B, Cp), jnp.float32),
        grid_spec=pltpu.PrefetchScalarGridSpec(
            num_scalar_prefetch=0,
            grid=(b_blocks, n_blocks),
            in_specs=[
                pl.BlockSpec((TB, TN, CHWp), lambda b, n: (b, n, 0)),   # streamed x
                resident((CHWp, Dp)), resident((1, Dp)),
                resident((Dp, Hp)), resident((1, Hp)),
                resident((1, Hp)),
                resident((Dp, Cp)), resident((1, Cp)),
            ],
            out_specs=pl.BlockSpec((TB, Cp), lambda b, n: (b, 0)),
            scratch_shapes=[
                pltpu.VMEM((TB, 1, 1), jnp.float32),    # running max
                pltpu.VMEM((TB, 1, 1), jnp.float32),    # running sum of exp
                pltpu.VMEM((TB, 1, Dp), jnp.float32),   # running weighted feature sum
            ]),
        compiler_params=pltpu.CompilerParams(
            dimension_semantics=("parallel", "arbitrary"),
            vmem_limit_bytes=32 * 1024 * 1024),
    )(xf, wfe_p, bfe_p, w1_p, b1_p, w2_p, wc_p, bc_p)

    return out_padded[:, :num_classes]


def reference_forward(x, params):
    """Pure-JAX reference mirroring the PyTorch forward (with the same FE stand-in)."""
    B, N, C, H, W = x.shape
    wfe, bfe, w1, b1, w2, b2, wc, bc = params
    pooled = jnp.mean(x.reshape(B, N, C, H * W), axis=-1)
    feats = jnp.einsum('bnc,cd->bnd', pooled, wfe) + bfe
    h = jnp.tanh(jnp.einsum('bnd,dk->bnk', feats, w1) + b1)
    scores = jnp.einsum('bnk,kl->bnl', h, w2) + b2
    attn = jax.nn.softmax(scores, axis=1)
    attended = jnp.sum(feats * attn, axis=1)
    return attended @ wc + bc


if __name__ == "__main__":
    # Small shapes consistent with the module's forward: (batch, num_tiles, C, H, W).
    # N=16 with TN=8 gives two tile-grid steps so the online-softmax path is exercised.
    B, N, C, H, W = 2, 16, 4, 16, 16
    D = 32            # image_feature_dim
    HIDDEN = 128      # attention hidden width (fixed by the module)
    NUM_CLASSES = 3

    key = jax.random.PRNGKey(0)
    keys = jax.random.split(key, 9)
    x = jax.random.normal(keys[0], (B, N, C, H, W), jnp.float32)

    # Deterministic synthetic parameters (shapes dictated by the module's __init__).
    wfe = jax.random.normal(keys[1], (C, D), jnp.float32) * 0.1
    bfe = jax.random.normal(keys[2], (1, D), jnp.float32) * 0.01
    w1 = jax.random.normal(keys[3], (D, HIDDEN), jnp.float32) * 0.1
    b1 = jax.random.normal(keys[4], (1, HIDDEN), jnp.float32) * 0.01
    w2 = jax.random.normal(keys[5], (HIDDEN, 1), jnp.float32) * 0.1
    b2 = jax.random.normal(keys[6], (1, 1), jnp.float32) * 0.01
    wc = jax.random.normal(keys[7], (D, NUM_CLASSES), jnp.float32) * 0.1
    bc = jax.random.normal(keys[8], (1, NUM_CLASSES), jnp.float32) * 0.01
    params = (wfe, bfe, w1, b1, w2, b2, wc, bc)

    logits = attention_mil_forward(x, params, tile_block=8)
    jax.block_until_ready(logits)

    ref = reference_forward(x, params)
    assert logits.shape == (B, NUM_CLASSES), logits.shape
    assert jnp.allclose(logits, ref, atol=5e-4, rtol=5e-4), (logits, ref)

    print("KERNEL_OK")
</pallas_src>

<mosaic_0001>
module attributes {stable_mosaic.version = 11 : i64} {
  func.func @attention_mil_kernel(%arg0: i32, %arg1: i32, %arg2: memref<2x8x1024xf32, #tpu.memory_space<vmem>>, %arg3: memref<1024x128xf32, #tpu.memory_space<vmem>>, %arg4: memref<1x128xf32, #tpu.memory_space<vmem>>, %arg5: memref<128x128xf32, #tpu.memory_space<vmem>>, %arg6: memref<1x128xf32, #tpu.memory_space<vmem>>, %arg7: memref<1x128xf32, #tpu.memory_space<vmem>>, %arg8: memref<128x128xf32, #tpu.memory_space<vmem>>, %arg9: memref<1x128xf32, #tpu.memory_space<vmem>>, %arg10: memref<2x128xf32, #tpu.memory_space<vmem>>, %arg11: memref<2x1x1xf32, #tpu.memory_space<vmem>>, %arg12: memref<2x1x1xf32, #tpu.memory_space<vmem>>, %arg13: memref<2x1x128xf32, #tpu.memory_space<vmem>>) attributes {dimension_semantics = [#tpu.dimension_semantics<parallel>, #tpu.dimension_semantics<arbitrary>], iteration_bounds = array<i64: 1, 2>, scalar_prefetch = 0 : i64, scratch_operands = 3 : i64, tpu.core_type = #tpu.core_type<tc>, window_params = [{transform_indices = @transform_0, window_bounds = array<i64: 2, 8, 1024>}, {pipeline_mode = #tpu.pipeline_mode<synchronous>, transform_indices = @transform_1, window_bounds = array<i64: 1024, 128>}, {pipeline_mode = #tpu.pipeline_mode<synchronous>, transform_indices = @transform_2, window_bounds = array<i64: 1, 128>}, {pipeline_mode = #tpu.pipeline_mode<synchronous>, transform_indices = @transform_3, window_bounds = array<i64: 128, 128>}, {pipeline_mode = #tpu.pipeline_mode<synchronous>, transform_indices = @transform_4, window_bounds = array<i64: 1, 128>}, {pipeline_mode = #tpu.pipeline_mode<synchronous>, transform_indices = @transform_5, window_bounds = array<i64: 1, 128>}, {pipeline_mode = #tpu.pipeline_mode<synchronous>, transform_indices = @transform_6, window_bounds = array<i64: 128, 128>}, {pipeline_mode = #tpu.pipeline_mode<synchronous>, transform_indices = @transform_7, window_bounds = array<i64: 1, 128>}, {transform_indices = @transform_8, window_bounds = array<i64: 2, 128>}]} {
    %c0_i32 = arith.constant 0 : i32
    %0 = arith.cmpi eq, %arg1, %c0_i32 : i32
    %1 = arith.extui %0 : i1 to i32
    %c0_i32_0 = arith.constant 0 : i32
    %2 = arith.cmpi ne, %1, %c0_i32_0 : i32
    scf.if %2 {
      %cst_37 = arith.constant 0xFF800000 : f32
      %51 = vector.broadcast %cst_37 : f32 to vector<2x1x1xf32>
      %c0_38 = arith.constant 0 : index
      %c0_39 = arith.constant 0 : index
      %c0_40 = arith.constant 0 : index
      %52 = vector.load %arg11[%c0_38, %c0_39, %c0_40] : memref<2x1x1xf32, #tpu.memory_space<vmem>>, vector<2x1x1xf32>
      tpu.vector_store %arg11[%c0_38, %c0_39, %c0_40], %51 {strides = array<i32>} : memref<2x1x1xf32, #tpu.memory_space<vmem>>, vector<2x1x1xf32>,
      %cst_41 = arith.constant 0.000000e+00 : f32
      %53 = vector.broadcast %cst_41 : f32 to vector<2x1x1xf32>
      %c0_42 = arith.constant 0 : index
      %c0_43 = arith.constant 0 : index
      %c0_44 = arith.constant 0 : index
      %54 = vector.load %arg12[%c0_42, %c0_43, %c0_44] : memref<2x1x1xf32, #tpu.memory_space<vmem>>, vector<2x1x1xf32>
      tpu.vector_store %arg12[%c0_42, %c0_43, %c0_44], %53 {strides = array<i32>} : memref<2x1x1xf32, #tpu.memory_space<vmem>>, vector<2x1x1xf32>,
      %cst_45 = arith.constant 0.000000e+00 : f32
      %55 = vector.broadcast %cst_45 : f32 to vector<2x1x128xf32>
      %c0_46 = arith.constant 0 : index
      %c0_47 = arith.constant 0 : index
      %c0_48 = arith.constant 0 : index
      %56 = vector.load %arg13[%c0_46, %c0_47, %c0_48] : memref<2x1x128xf32, #tpu.memory_space<vmem>>, vector<2x1x128xf32>
      tpu.vector_store %arg13[%c0_46, %c0_47, %c0_48], %55 {strides = array<i32>} : memref<2x1x128xf32, #tpu.memory_space<vmem>>, vector<2x1x128xf32>,
    } else {
    }
    %c0 = arith.constant 0 : index
    %c0_1 = arith.constant 0 : index
    %c0_2 = arith.constant 0 : index
    %3 = vector.load %arg2[%c0, %c0_1, %c0_2] : memref<2x8x1024xf32, #tpu.memory_space<vmem>>, vector<2x8x1024xf32>
    %4 = vector.shape_cast %3 : vector<2x8x1024xf32> to vector<16x1024xf32>
    %c0_3 = arith.constant 0 : index
    %c0_4 = arith.constant 0 : index
    %5 = vector.load %arg3[%c0_3, %c0_4] : memref<1024x128xf32, #tpu.memory_space<vmem>>, vector<1024x128xf32>
    %cst = arith.constant dense<0.000000e+00> : vector<16x128xf32>
    %6 = tpu.matmul %4, %5, %cst {dimension_numbers = #tpu.dot_dimension_numbers<[1], [0], [0], [1], [0, 0, 1, 1], [], []>} : vector<16x1024xf32>, vector<1024x128xf32>, vector<16x128xf32> -> vector<16x128xf32>
    %c0_5 = arith.constant 0 : index
    %c0_6 = arith.constant 0 : index
    %7 = vector.load %arg4[%c0_5, %c0_6] : memref<1x128xf32, #tpu.memory_space<vmem>>, vector<1x128xf32>
    %8 = vector.broadcast %7 : vector<1x128xf32> to vector<16x128xf32>
    %9 = arith.addf %6, %8 : vector<16x128xf32>
    %c0_7 = arith.constant 0 : index
    %c0_8 = arith.constant 0 : index
    %10 = vector.load %arg5[%c0_7, %c0_8] : memref<128x128xf32, #tpu.memory_space<vmem>>, vector<128x128xf32>
    %cst_9 = arith.constant dense<0.000000e+00> : vector<16x128xf32>
    %11 = tpu.matmul %9, %10, %cst_9 {dimension_numbers = #tpu.dot_dimension_numbers<[1], [0], [0], [1], [0, 0, 1, 1], [], []>} : vector<16x128xf32>, vector<128x128xf32>, vector<16x128xf32> -> vector<16x128xf32>
    %c0_10 = arith.constant 0 : index
    %c0_11 = arith.constant 0 : index
    %12 = vector.load %arg6[%c0_10, %c0_11] : memref<1x128xf32, #tpu.memory_space<vmem>>, vector<1x128xf32>
    %13 = vector.broadcast %12 : vector<1x128xf32> to vector<16x128xf32>
    %14 = arith.addf %11, %13 : vector<16x128xf32>
    %15 = math.tanh %14 : vector<16x128xf32>
    %c0_12 = arith.constant 0 : index
    %c0_13 = arith.constant 0 : index
    %16 = vector.load %arg7[%c0_12, %c0_13] : memref<1x128xf32, #tpu.memory_space<vmem>>, vector<1x128xf32>
    %17 = vector.broadcast %16 : vector<1x128xf32> to vector<16x128xf32>
    %18 = arith.mulf %15, %17 : vector<16x128xf32>
    %cst_14 = arith.constant dense<0.000000e+00> : vector<16xf32>
    %19 = vector.multi_reduction <add>, %18, %cst_14 [1] : vector<16x128xf32> to vector<16xf32>
    %20 = vector.shape_cast %19 : vector<16xf32> to vector<16x1xf32>
    %21 = vector.shape_cast %9 : vector<16x128xf32> to vector<2x8x128xf32>
    %22 = vector.shape_cast %20 : vector<16x1xf32> to vector<2x8x1xf32>
    %c0_15 = arith.constant 0 : index
    %c0_16 = arith.constant 0 : index
    %c0_17 = arith.constant 0 : index
    %23 = vector.load %arg11[%c0_15, %c0_16, %c0_17] : memref<2x1x1xf32, #tpu.memory_space<vmem>>, vector<2x1x1xf32>
    %cst_18 = arith.constant dense<0xFF800000> : vector<2x1xf32>
    %24 = vector.multi_reduction <maximumf>, %22, %cst_18 [1] : vector<2x8x1xf32> to vector<2x1xf32>
    %25 = vector.shape_cast %24 : vector<2x1xf32> to vector<2x1x1xf32>
    %26 = arith.maximumf %23, %25 : vector<2x1x1xf32>
    %27 = arith.subf %23, %26 : vector<2x1x1xf32>
    %28 = math.exp %27 : vector<2x1x1xf32>
    %29 = vector.broadcast %26 : vector<2x1x1xf32> to vector<2x8x1xf32>
    %30 = arith.subf %22, %29 : vector<2x8x1xf32>
    %31 = math.exp %30 : vector<2x8x1xf32>
    %c0_19 = arith.constant 0 : index
    %c0_20 = arith.constant 0 : index
    %c0_21 = arith.constant 0 : index
    %32 = vector.load %arg12[%c0_19, %c0_20, %c0_21] : memref<2x1x1xf32, #tpu.memory_space<vmem>>, vector<2x1x1xf32>
    %33 = arith.mulf %28, %32 : vector<2x1x1xf32>
    %cst_22 = arith.constant dense<0.000000e+00> : vector<2x1xf32>
    %34 = vector.multi_reduction <add>, %31, %cst_22 [1] : vector<2x8x1xf32> to vector<2x1xf32>
    %35 = vector.shape_cast %34 : vector<2x1xf32> to vector<2x1x1xf32>
    %36 = arith.addf %33, %35 : vector<2x1x1xf32>
    %c0_23 = arith.constant 0 : index
    %c0_24 = arith.constant 0 : index
    %c0_25 = arith.constant 0 : index
    %37 = vector.load %arg12[%c0_23, %c0_24, %c0_25] : memref<2x1x1xf32, #tpu.memory_space<vmem>>, vector<2x1x1xf32>
    tpu.vector_store %arg12[%c0_23, %c0_24, %c0_25], %36 {strides = array<i32>} : memref<2x1x1xf32, #tpu.memory_space<vmem>>, vector<2x1x1xf32>,
    %c0_26 = arith.constant 0 : index
    %c0_27 = arith.constant 0 : index
    %c0_28 = arith.constant 0 : index
    %38 = vector.load %arg13[%c0_26, %c0_27, %c0_28] : memref<2x1x128xf32, #tpu.memory_space<vmem>>, vector<2x1x128xf32>
    %39 = vector.broadcast %28 : vector<2x1x1xf32> to vector<2x1x128xf32>
    %40 = arith.mulf %39, %38 : vector<2x1x128xf32>
    %41 = vector.broadcast %31 : vector<2x8x1xf32> to vector<2x8x128xf32>
    %42 = arith.mulf %41, %21 : vector<2x8x128xf32>
    %cst_29 = arith.constant dense<0.000000e+00> : vector<2x128xf32>
    %43 = vector.multi_reduction <add>, %42, %cst_29 [1] : vector<2x8x128xf32> to vector<2x128xf32>
    %44 = vector.shape_cast %43 : vector<2x128xf32> to vector<2x1x128xf32>
    %45 = arith.addf %40, %44 : vector<2x1x128xf32>
    %c0_30 = arith.constant 0 : index
    %c0_31 = arith.constant 0 : index
    %c0_32 = arith.constant 0 : index
    %46 = vector.load %arg13[%c0_30, %c0_31, %c0_32] : memref<2x1x128xf32, #tpu.memory_space<vmem>>, vector<2x1x128xf32>
    tpu.vector_store %arg13[%c0_30, %c0_31, %c0_32], %45 {strides = array<i32>} : memref<2x1x128xf32, #tpu.memory_space<vmem>>, vector<2x1x128xf32>,
    %c0_33 = arith.constant 0 : index
    %c0_34 = arith.constant 0 : index
    %c0_35 = arith.constant 0 : index
    %47 = vector.load %arg11[%c0_33, %c0_34, %c0_35] : memref<2x1x1xf32, #tpu.memory_space<vmem>>, vector<2x1x1xf32>
    tpu.vector_store %arg11[%c0_33, %c0_34, %c0_35], %26 {strides = array<i32>} : memref<2x1x1xf32, #tpu.memory_space<vmem>>, vector<2x1x1xf32>,
    %c1_i32 = arith.constant 1 : i32
    %48 = arith.cmpi eq, %arg1, %c1_i32 : i32
    %49 = arith.extui %48 : i1 to i32
    %c0_i32_36 = arith.constant 0 : i32
    %50 = arith.cmpi ne, %49, %c0_i32_36 : i32
    scf.if %50 {
      %c0_37 = arith.constant 0 : index
      %c0_38 = arith.constant 0 : index
      %c0_39 = arith.constant 0 : index
      %51 = vector.load %arg13[%c0_37, %c0_38, %c0_39] : memref<2x1x128xf32, #tpu.memory_space<vmem>>, vector<2x1x128xf32>
      %c0_40 = arith.constant 0 : index
      %c0_41 = arith.constant 0 : index
      %c0_42 = arith.constant 0 : index
      %52 = vector.load %arg12[%c0_40, %c0_41, %c0_42] : memref<2x1x1xf32, #tpu.memory_space<vmem>>, vector<2x1x1xf32>
      %53 = vector.broadcast %52 : vector<2x1x1xf32> to vector<2x1x128xf32>
      %54 = arith.divf %51, %53 : vector<2x1x128xf32>
      %55 = vector.shape_cast %54 : vector<2x1x128xf32> to vector<2x128xf32>
      %c0_43 = arith.constant 0 : index
      %c0_44 = arith.constant 0 : index
      %56 = vector.load %arg8[%c0_43, %c0_44] : memref<128x128xf32, #tpu.memory_space<vmem>>, vector<128x128xf32>
      %cst_45 = arith.constant dense<0.000000e+00> : vector<2x128xf32>
      %57 = tpu.matmul %55, %56, %cst_45 {dimension_numbers = #tpu.dot_dimension_numbers<[1], [0], [0], [1], [0, 0, 1, 1], [], []>} : vector<2x128xf32>, vector<128x128xf32>, vector<2x128xf32> -> vector<2x128xf32>
      %c0_46 = arith.constant 0 : index
      %c0_47 = arith.constant 0 : index
      %58 = vector.load %arg9[%c0_46, %c0_47] : memref<1x128xf32, #tpu.memory_space<vmem>>, vector<1x128xf32>
      %59 = vector.broadcast %58 : vector<1x128xf32> to vector<2x128xf32>
      %60 = arith.addf %57, %59 : vector<2x128xf32>
      %c0_48 = arith.constant 0 : index
      %c0_49 = arith.constant 0 : index
      %61 = vector.load %arg10[%c0_48, %c0_49] : memref<2x128xf32, #tpu.memory_space<vmem>>, vector<2x128xf32>
      tpu.vector_store %arg10[%c0_48, %c0_49], %60 {strides = array<i32>} : memref<2x128xf32, #tpu.memory_space<vmem>>, vector<2x128xf32>,
    } else {
    }
    return
  }
  func.func @transform_0(%arg0: i32, %arg1: i32) -> (i32, i32, i32) {
    %c0_i32 = arith.constant 0 : i32
    %c0_i32_0 = arith.constant 0 : i32
    return %arg0, %arg1, %c0_i32 : i32, i32, i32
  }
  func.func @transform_1(%arg0: i32, %arg1: i32) -> (i32, i32) {
    %c0_i32 = arith.constant 0 : i32
    %c0_i32_0 = arith.constant 0 : i32
    %c0_i32_1 = arith.constant 0 : i32
    return %c0_i32, %c0_i32_0 : i32, i32
  }
  func.func @transform_2(%arg0: i32, %arg1: i32) -> (i32, i32) {
    %c0_i32 = arith.constant 0 : i32
    %c0_i32_0 = arith.constant 0 : i32
    %c0_i32_1 = arith.constant 0 : i32
    return %c0_i32, %c0_i32_0 : i32, i32
  }
  func.func @transform_3(%arg0: i32, %arg1: i32) -> (i32, i32) {
    %c0_i32 = arith.constant 0 : i32
    %c0_i32_0 = arith.constant 0 : i32
    %c0_i32_1 = arith.constant 0 : i32
    return %c0_i32, %c0_i32_0 : i32, i32
  }
  func.func @transform_4(%arg0: i32, %arg1: i32) -> (i32, i32) {
    %c0_i32 = arith.constant 0 : i32
    %c0_i32_0 = arith.constant 0 : i32
    %c0_i32_1 = arith.constant 0 : i32
    return %c0_i32, %c0_i32_0 : i32, i32
  }
  func.func @transform_5(%arg0: i32, %arg1: i32) -> (i32, i32) {
    %c0_i32 = arith.constant 0 : i32
    %c0_i32_0 = arith.constant 0 : i32
    %c0_i32_1 = arith.constant 0 : i32
    return %c0_i32, %c0_i32_0 : i32, i32
  }
  func.func @transform_6(%arg0: i32, %arg1: i32) -> (i32, i32) {
    %c0_i32 = arith.constant 0 : i32
    %c0_i32_0 = arith.constant 0 : i32
    %c0_i32_1 = arith.constant 0 : i32
    return %c0_i32, %c0_i32_0 : i32, i32
  }
  func.func @transform_7(%arg0: i32, %arg1: i32) -> (i32, i32) {
    %c0_i32 = arith.constant 0 : i32
    %c0_i32_0 = arith.constant 0 : i32
    %c0_i32_1 = arith.constant 0 : i32
    return %c0_i32, %c0_i32_0 : i32, i32
  }
  func.func @transform_8(%arg0: i32, %arg1: i32) -> (i32, i32) {
    %c0_i32 = arith.constant 0 : i32
    %c0_i32_0 = arith.constant 0 : i32
    return %arg0, %c0_i32 : i32, i32
  }
}

</mosaic_0001>

<bundles_post_ra>
// kernel: tpu_custom_call.1
= control target key start
LH: loop header
LB: loop body
LE: loop exit
PB: predicated region body
PF: predicated region fallthrough
CT: control target
= control target key end

     0   :  { %s1705_s0 = inlined_call_operand.hbm [shape: f32[2,16,1024], index: 0, kind: input, shape index: {}]   ;;  %s1706_s1 = inlined_call_operand.hbm [shape: f32[1024,128], index: 1, kind: input, shape index: {}]   ;;  %s1707_s2 = inlined_call_operand.vmem [shape: f32[1,128], index: 2, kind: input, shape index: {}]   ;;  %s1708_s3 = inlined_call_operand.hbm [shape: f32[128,128], index: 3, kind: input, shape index: {}]   ;;  %s1709_s4 = inlined_call_operand.vmem [shape: f32[1,128], index: 4, kind: input, shape index: {}]   ;;  %s1710_s5 = inlined_call_operand.vmem [shape: f32[1,128], index: 5, kind: input, shape index: {}]   ;;  %s1711_s6 = inlined_call_operand.hbm [shape: f32[128,128], index: 6, kind: input, shape index: {}]   ;;  %s1712_s7 = inlined_call_operand.vmem [shape: f32[1,128], index: 7, kind: input, shape index: {}]   ;;  %s1713_s8 = inlined_call_operand.hbm [shape: f32[2,128], index: 8, kind: output, shape index: {}]  }
   0x1   :  { %1715 = sst [smem:[#allocation18_spill]] %s1706_s1 }
   0x2   :  { %1716 = sst [smem:[#allocation19_spill]] %s1708_s3 }
   0x3   :  { %1717 = sst [smem:[#allocation20_spill]] %s1711_s6 }
   0x4   :  { %13 = vsyncpa [#allocation6], 0 }
   0x5   :  { %15 = vsyncpa [#allocation6 + $0x1], 0 }
   0x6   :  { %16 = vsyncpa [#allocation9], 0 }
   0x7   :  { %17 = vsyncpa [#allocation12], 0 }
   0x8   :  { %18 = vsyncpa [#allocation7], 0  ;;  %s1524_s27 = smov 0   ;;  %s1526_s28 = smov 0  }
   0x9   :  { %s1528_s29 = smov 0   ;;  %s1530_s30 = smov 0  }
   0xa   :  { %s1532_s9 = smov 0   ;;  %s1534_s10 = smov 0  }
   0xb LB: > { %s1714_s11 = sadd.s32 4294967295, %s1464_s10   ;;  %p58_p0 = scmp.ne.s32.totalorder %s1448_s28, %s1444_s27  ;;  %s1464_s10 = sphi %s1534_s10, %s24_s10   ;;  %s1460_s9 = sphi %s1532_s9, %s1731_s9   ;;  %s1456_s30 = sphi %s1530_s30, %s1730_s30   ;;  %s1452_s29 = sphi %s1528_s29, %s1729_s29   ;;  %s1448_s28 = sphi %s1526_s28, %s1728_s28   ;;  %s1444_s27 = sphi %s1524_s27, %s1727_s27  }
   0xc   : > { %p1556_p1 = scmp.eq.s32.totalorder %s1714_s11, 0  ;;  %p1092_p2 = scmp.ge.s32.totalorder %s1464_s10, 1 }
   0xd   : > { %p242_p3 = scmp.lt.s32.totalorder %s1464_s10, 3  ;;  %s1720_s1 = sld [smem:[#allocation18_spill]] }
   0xe   : > { %p1564_p4 = por %p1556_p1, %p58_p0  ;;  %s1466_s18 = smov [#allocation8]  }
   0xf   : > { %p1571_p5 = pnand %p1092_p2, %p242_p3  ;;  %s255_s19 = sshll.u32 %s1466_s18, 4  ;;  %s256_s19 = int_to_ptr.vmem [resolvable:$true] %s255_s19 }
  0x10   : > { %s1723_s3 = sld [smem:[#allocation19_spill]]  ;;  %s1467_s24 = smov 128  }
  0x11   : > { %p1146_p6 = pneg %p1571_p5  ;;  %s1468_s25 = smov 8  }
  0x12   : > { %s1469_s26 = smov [#allocation10]   ;;  %s1724_s6 = sld [smem:[#allocation20_spill]] }
  0x13   : > { %s253_s16 = sshll.u32 %s1720_s1, 4  ;;  %p1579_p7 = pnand %p1146_p6, %p1556_p1  ;;  %s254_s16 = int_to_ptr.hbm [resolvable:$true] %s253_s16 }
  0x14   : > { %s272_s27 = sshll.u32 %s1469_s26, 4  ;;  %s1470_s21 = smov [#allocation11]   ;;  %s273_s27 = int_to_ptr.vmem [resolvable:$true] %s272_s27 }
  0x15   : > { %1149 = dma.hbm_to_vmem [thread:$0]  (!%p1579_p7), %s254_s16, 16384, %s256_s19, [#allocation9], %s1467_s24, %s1467_s24, %s1468_s25  }
  0x16   : > { %s270_s23 = sshll.u32 %s1723_s3, 4  ;;  %s292_s22 = sshll.u32 %s1470_s21, 4  ;;  %s271_s23 = int_to_ptr.hbm [resolvable:$true] %s270_s23  ;;  %s293_s22 = int_to_ptr.vmem [resolvable:$true] %s292_s22 }
  0x17   : > { %1152 = dma.hbm_to_vmem [thread:$0]  (!%p1579_p7), %s271_s23, 2048, %s273_s27, [#allocation9], %s1467_s24, %s1467_s24, %s1468_s25  }
  0x18   : > { %s290_s18 = sshll.u32 %s1724_s6, 4  ;;  %s33_s16 = sadd.s32 1, %s1460_s9  ;;  %s291_s18 = int_to_ptr.hbm [resolvable:$true] %s290_s18 }
  0x19   : > { %1155 = dma.hbm_to_vmem [thread:$0]  (!%p1579_p7), %s291_s18, 2048, %s293_s22, [#allocation12], %s1467_s24, %s1467_s24, %s1468_s25  }
  0x1a   : > { %p34_p8 = scmp.ge.s32.totalorder %s33_s16, 2  ;;  %s45_s19 = sadd.s32 1, %s1452_s29 }
  0x1b   : > { %p52_p9 = scmp.ne.s32.totalorder %s1452_s29, %s1448_s28  ;;  %p53_p10 = scmp.eq.s32.totalorder %s1464_s10, 0 }
  0x1c   : > { %s1733_s16 = smov (%p34_p8, %s33_s16), 0  ;;  %p1163_p12 = scmp.lt.s32.totalorder %s1464_s10, 2 }
  0x1d   : > { %p1602_p11 = por %p53_p10, %p52_p9  ;;  %s41_s23 = ssub.s32 %s1460_s9, %s1733_s16 }
  0x1e   : > { %s309_s27 = sand.u32 1, %s1452_s29   ;;  %p43_p13 = scmp.eq.s32.totalorder %s41_s23, 0 }
  0x1f   : > { %s1097_s20 = sshll.u32 %s309_s27, 7  ;;  %s1111_s24 = sshll.u32 %s1460_s9, 6 }
  0x20   : > { %s1612_s25 = scalar_select %p43_p13, %s1452_s29, %s45_s19  }
  0x21   : > { %s321_s18 = scalar_lea.hbm %s1705_s0, %s1111_s24  ;;  %s313_s22 = scalar_lea.vmem [#allocation5], %s1097_s20 }
  0x22   : > { %s322_s21 = sshll.u32 %s321_s18, 4  ;;  %s324_s11 = sshll.u32 %s313_s22, 4  ;;  %s323_s21 = int_to_ptr.hbm [resolvable:$true] %s322_s21  ;;  %s325_s11 = int_to_ptr.vmem [resolvable:$true] %s324_s11 }
  0x23   : > { %p1157_p0 = pnand %p1163_p12, %p1602_p11  ;;  %s310_s1 = scalar_lea.sflag [#allocation6], %s309_s27 }
  0x24   : > { %s1471_s3 = smov 2048   ;;  %s1472_s6 = smov 1024  }
  0x25   : > { %s1473_s23 = smov 64   ;;  %336 = sbr.rel (%p1571_p5) target bundleno = 975 (0x3cf), region = 52 }
  0x26   : > { %1159 = dma.hbm_to_vmem [thread:$0]  (!%p1157_p0), %s323_s21, 2048, %s325_s11, %s310_s1, %s1471_s3, %s1472_s6, %s1473_s23  }
  0x27   : > { %s338_s19 = sand.u32 (!%p1571_p5), 1, %s1448_s28  }
  0x28   : > { %s1101_s24 = sshll.u32 (!%p1571_p5), %s338_s19, 7  ;;  %s339_s14 = scalar_lea.sflag (!%p1571_p5), [#allocation6], %s338_s19 }
  0x29   : > { %s1624_s20 = scalar_lea.vmem (!%p1571_p5), [#allocation5], %s1101_s24 }
  0x2a   : > { %1427 = dma.done.wait (%p1564_p4), %s339_s14, 2048  }
  0x2b   : > { %1429 = vsyncadd (%p1564_p4), %s339_s14, 4294965248 }
  0x2c   : > { %1431 = dma.done.wait (%p1556_p1), [#allocation9], 18432  }
  0x2d   : > { %1433 = vsyncadd (%p1556_p1), [#allocation9], 4294948864 }
  0x2e   : > { %1435 = dma.done.wait (%p1556_p1), [#allocation12], 2048  }
  0x2f   : > { %1437 = vsyncadd (%p1556_p1), [#allocation12], 4294965248  ;;  %p1105_p2 = scmp.ne.s32.totalorder %s1456_s30, 0 }
  0x31   : > { %390 = sbr.rel (%p1105_p2) target bundleno = 61 (0x3d), region = 72 }
  0x36   : > { %vm391_vm0 = vcmask 0   ;;  %v1474_v0 = vmov -inf   ;;  %v1475_v1 = vmov 0.0  }
  0x37   : > { %392 = vst.msk [vmem:[#allocation2] sm:$0x1] %vm391_vm0, %v1474_v0 }
  0x38   : > { %393 = vst.msk [vmem:[#allocation2 + $0x1] sm:$0x1] %vm391_vm0, %v1474_v0 }
  0x39   : > { %394 = vst.msk [vmem:[#allocation3] sm:$0x1] %vm391_vm0, %v1475_v1 }
  0x3a   : > { %395 = vst.msk [vmem:[#allocation3 + $0x1] sm:$0x1] %vm391_vm0, %v1475_v1 }
  0x3b   : > { %396 = vst [vmem:[#allocation4] sm:$0x1] %v1475_v1 }
  0x3c   : > { %397 = vst [vmem:[#allocation4 + $0x1] sm:$0x1] %v1475_v1 }
  0x3d PF: > { %v429_v2 = vld [vmem:[#allocation8 + $0x78] sm:$0xff]  ;;  %v428_v4 = vld [vmem:[#allocation8 + $0x70] sm:$0xff]  ;;  %v427_v8 = vld [vmem:[#allocation8 + $0x68] sm:$0xff]  ;;  %vm840_vm1 = vcmask 0   ;;  %vm823_vm2 = vcmask 7168   ;;  %p1106_p1 = scmp.ne.s32.totalorder %s1456_s30, 1 }
  0x3e   : > { %v461_v3 = vld [vmem:[#allocation8 + $0x178] sm:$0xff]  ;;  %546 = vmatpush.msra.mxu0 %v429_v2  ;;  %v460_v6 = vld [vmem:[#allocation8 + $0x170] sm:$0xff]  ;;  %v459_v10 = vld [vmem:[#allocation8 + $0x168] sm:$0xff] }
  0x3f   : > { %592 = vmatpush.msra.mxu2 %v461_v3  ;;  %v445_v5 = vld [vmem:[#allocation8 + $0xf8] sm:$0xff]  ;;  %v444_v9 = vld [vmem:[#allocation8 + $0xf0] sm:$0xff]  ;;  %v443_v12 = vld [vmem:[#allocation8 + $0xe8] sm:$0xff] }
  0x40   : > { %v477_v7 = vld [vmem:[#allocation8 + $0x1f8] sm:$0xff]  ;;  %569 = vmatpush.msra.mxu1 %v445_v5  ;;  %547 = vmatpush.msra.mxu0 %v428_v4  ;;  %v476_v11 = vld [vmem:[#allocation8 + $0x1f0] sm:$0xff]  ;;  %v426_v13 = vld [vmem:[#allocation8 + $0x60] sm:$0xff] }
  0x41   : > { %615 = vmatpush.msra.mxu3 %v477_v7  ;;  %593 = vmatpush.msra.mxu2 %v460_v6  ;;  %v458_v14 = vld [vmem:[#allocation8 + $0x160] sm:$0xff]  ;;  %v475_v15 = vld [vmem:[#allocation8 + $0x1e8] sm:$0xff]  ;;  %v425_v18 = vld [vmem:[#allocation8 + $0x58] sm:$0xff] }
  0x42   : > { %570 = vmatpush.msra.mxu1 %v444_v9  ;;  %548 = vmatpush.msra.mxu0 %v427_v8  ;;  %v442_v16 = vld [vmem:[#allocation8 + $0xe0] sm:$0xff]  ;;  %v457_v19 = vld [vmem:[#allocation8 + $0x158] sm:$0xff]  ;;  %v424_v22 = vld [vmem:[#allocation8 + $0x50] sm:$0xff] }
  0x43   : > { %616 = vmatpush.msra.mxu3 %v476_v11  ;;  %594 = vmatpush.msra.mxu2 %v459_v10  ;;  %v474_v17 = vld [vmem:[#allocation8 + $0x1e0] sm:$0xff]  ;;  %v441_v20 = vld [vmem:[#allocation8 + $0xd8] sm:$0xff]  ;;  %v456_v23 = vld [vmem:[#allocation8 + $0x150] sm:$0xff] }
  0x44   : > { %571 = vmatpush.msra.mxu1 %v443_v12  ;;  %549 = vmatpush.msra.mxu0 %v426_v13  ;;  %v473_v21 = vld [vmem:[#allocation8 + $0x1d8] sm:$0xff]  ;;  %v440_v24 = vld [vmem:[#allocation8 + $0xd0] sm:$0xff]  ;;  %v423_v26 = vld [vmem:[#allocation8 + $0x48] sm:$0xff] }
  0x45   : > { %617 = vmatpush.msra.mxu3 %v475_v15  ;;  %595 = vmatpush.msra.mxu2 %v458_v14  ;;  %v472_v25 = vld [vmem:[#allocation8 + $0x1d0] sm:$0xff]  ;;  %v455_v27 = vld [vmem:[#allocation8 + $0x148] sm:$0xff]  ;;  %v422_v30 = vld [vmem:[#allocation8 + $0x40] sm:$0xff] }
  0x46   : > { %572 = vmatpush.msra.mxu1 %v442_v16  ;;  %550 = vmatpush.msra.mxu0 %v425_v18  ;;  %v439_v28 = vld [vmem:[#allocation8 + $0xc8] sm:$0xff]  ;;  %v454_v31 = vld [vmem:[#allocation8 + $0x140] sm:$0xff]  ;;  %v421_v34 = vld [vmem:[#allocation8 + $0x38] sm:$0xff] }
  0x47   : > { %618 = vmatpush.msra.mxu3 %v474_v17  ;;  %596 = vmatpush.msra.mxu2 %v457_v19  ;;  %v471_v29 = vld [vmem:[#allocation8 + $0x1c8] sm:$0xff]  ;;  %v438_v32 = vld [vmem:[#allocation8 + $0xc0] sm:$0xff]  ;;  %v453_v35 = vld [vmem:[#allocation8 + $0x138] sm:$0xff] }
  0x48   : > { %573 = vmatpush.msra.mxu1 %v441_v20  ;;  %551 = vmatpush.msra.mxu0 %v424_v22  ;;  %v470_v33 = vld [vmem:[#allocation8 + $0x1c0] sm:$0xff]  ;;  %v437_v36 = vld [vmem:[#allocation8 + $0xb8] sm:$0xff]  ;;  %v420_v38 = vld [vmem:[#allocation8 + $0x30] sm:$0xff] }
  0x49   : > { %619 = vmatpush.msra.mxu3 %v473_v21  ;;  %597 = vmatpush.msra.mxu2 %v456_v23  ;;  %v469_v37 = vld [vmem:[#allocation8 + $0x1b8] sm:$0xff]  ;;  %v452_v39 = vld [vmem:[#allocation8 + $0x130] sm:$0xff]  ;;  %v419_v42 = vld [vmem:[#allocation8 + $0x28] sm:$0xff] }
  0x4a   : > { %574 = vmatpush.msra.mxu1 %v440_v24  ;;  %552 = vmatpush.msra.mxu0 %v423_v26  ;;  %v436_v40 = vld [vmem:[#allocation8 + $0xb0] sm:$0xff]  ;;  %v451_v43 = vld [vmem:[#allocation8 + $0x128] sm:$0xff]  ;;  %v418_v46 = vld [vmem:[#allocation8 + $0x20] sm:$0xff] }
  0x4b   : > { %620 = vmatpush.msra.mxu3 %v472_v25  ;;  %598 = vmatpush.msra.mxu2 %v455_v27  ;;  %v468_v41 = vld [vmem:[#allocation8 + $0x1b0] sm:$0xff]  ;;  %v435_v44 = vld [vmem:[#allocation8 + $0xa8] sm:$0xff]  ;;  %v450_v47 = vld [vmem:[#allocation8 + $0x120] sm:$0xff] }
  0x4c   : > { %575 = vmatpush.msra.mxu1 %v439_v28  ;;  %553 = vmatpush.msra.mxu0 %v422_v30  ;;  %v467_v45 = vld [vmem:[#allocation8 + $0x1a8] sm:$0xff]  ;;  %v434_v48 = vld [vmem:[#allocation8 + $0xa0] sm:$0xff]  ;;  %v417_v50 = vld [vmem:[#allocation8 + $0x18] sm:$0xff] }
  0x4d   : > { %621 = vmatpush.msra.mxu3 %v471_v29  ;;  %599 = vmatpush.msra.mxu2 %v454_v31  ;;  %v466_v49 = vld [vmem:[#allocation8 + $0x1a0] sm:$0xff]  ;;  %v449_v51 = vld [vmem:[#allocation8 + $0x118] sm:$0xff]  ;;  %v416_v54 = vld [vmem:[#allocation8 + $0x10] sm:$0xff] }
  0x4e   : > { %576 = vmatpush.msra.mxu1 %v438_v32  ;;  %554 = vmatpush.msra.mxu0 %v421_v34  ;;  %v433_v52 = vld [vmem:[#allocation8 + $0x98] sm:$0xff]  ;;  %v448_v55 = vld [vmem:[#allocation8 + $0x110] sm:$0xff]  ;;  %v415_v58 = vld [vmem:[#allocation8 + $0x8] sm:$0xff] }
  0x4f   : > { %622 = vmatpush.msra.mxu3 %v470_v33  ;;  %600 = vmatpush.msra.mxu2 %v453_v35  ;;  %v465_v53 = vld [vmem:[#allocation8 + $0x198] sm:$0xff]  ;;  %v432_v56 = vld [vmem:[#allocation8 + $0x90] sm:$0xff]  ;;  %v447_v59 = vld [vmem:[#allocation8 + $0x108] sm:$0xff] }
  0x50   : > { %577 = vmatpush.msra.mxu1 %v437_v36  ;;  %555 = vmatpush.msra.mxu0 %v420_v38  ;;  %v464_v57 = vld [vmem:[#allocation8 + $0x190] sm:$0xff]  ;;  %v431_v60 = vld [vmem:[#allocation8 + $0x88] sm:$0xff]  ;;  %v414_v62 = vld [vmem:[#allocation8] sm:$0xff] }
  0x51   : > { %623 = vmatpush.msra.mxu3 %v469_v37  ;;  %601 = vmatpush.msra.mxu2 %v452_v39  ;;  %v463_v61 = vld [vmem:[#allocation8 + $0x188] sm:$0xff]  ;;  %v446_v63 = vld [vmem:[#allocation8 + $0x100] sm:$0xff]  ;;  %v493_v0 = vld [vmem:[#allocation8 + $0x278] sm:$0xff] }
  0x52   : > { %578 = vmatpush.msra.mxu1 %v436_v40  ;;  %556 = vmatpush.msra.mxu0 %v419_v42  ;;  %v525_v1 = vld [vmem:[#allocation8 + $0x378] sm:$0xff]  ;;  %v430_v2 = vld [vmem:[#allocation8 + $0x80] sm:$0xff]  ;;  %v492_v4 = vld [vmem:[#allocation8 + $0x270] sm:$0xff] }
  0x53   : > { %624 = vmatpush.msra.mxu3 %v468_v41  ;;  %602 = vmatpush.msra.mxu2 %v451_v43  ;;  %v462_v3 = vld [vmem:[#allocation8 + $0x180] sm:$0xff]  ;;  %v509_v5 = vld [vmem:[#allocation8 + $0x2f8] sm:$0xff]  ;;  %v524_v6 = vld [vmem:[#allocation8 + $0x370] sm:$0xff] }
  0x54   : > { %579 = vmatpush.msra.mxu1 %v435_v44  ;;  %557 = vmatpush.msra.mxu0 %v418_v46  ;;  %v541_v7 = vld [vmem:[#allocation8 + $0x3f8] sm:$0xff]  ;;  %v491_v8 = vld [vmem:[#allocation8 + $0x268] sm:$0xff]  ;;  %v508_v9 = vld [vmem:[#allocation8 + $0x2f0] sm:$0xff] }
  0x55   : > { %625 = vmatpush.msra.mxu3 %v467_v45  ;;  %603 = vmatpush.msra.mxu2 %v450_v47  ;;  %v523_v10 = vld [vmem:[#allocation8 + $0x368] sm:$0xff]  ;;  %v540_v11 = vld [vmem:[#allocation8 + $0x3f0] sm:$0xff]  ;;  %v490_v12 = vld [vmem:[#allocation8 + $0x260] sm:$0xff] }
  0x56   : > { %580 = vmatpush.msra.mxu1 %v434_v48  ;;  %558 = vmatpush.msra.mxu0 %v417_v50  ;;  %v507_v13 = vld [vmem:[#allocation8 + $0x2e8] sm:$0xff]  ;;  %v522_v14 = vld [vmem:[#allocation8 + $0x360] sm:$0xff]  ;;  %v489_v16 = vld [vmem:[#allocation8 + $0x258] sm:$0xff] }
  0x57   : > { %626 = vmatpush.msra.mxu3 %v466_v49  ;;  %604 = vmatpush.msra.mxu2 %v449_v51  ;;  %v539_v15 = vld [vmem:[#allocation8 + $0x3e8] sm:$0xff]  ;;  %v506_v17 = vld [vmem:[#allocation8 + $0x2e0] sm:$0xff]  ;;  %v521_v18 = vld [vmem:[#allocation8 + $0x358] sm:$0xff] }
  0x58   : > { %581 = vmatpush.msra.mxu1 %v433_v52  ;;  %559 = vmatpush.msra.mxu0 %v416_v54  ;;  %v538_v19 = vld [vmem:[#allocation8 + $0x3e0] sm:$0xff]  ;;  %v488_v20 = vld [vmem:[#allocation8 + $0x250] sm:$0xff]  ;;  %v505_v21 = vld [vmem:[#allocation8 + $0x2d8] sm:$0xff] }
  0x59   : > { %627 = vmatpush.msra.mxu3 %v465_v53  ;;  %605 = vmatpush.msra.mxu2 %v448_v55  ;;  %v520_v22 = vld [vmem:[#allocation8 + $0x350] sm:$0xff]  ;;  %v537_v23 = vld [vmem:[#allocation8 + $0x3d8] sm:$0xff]  ;;  %v487_v24 = vld [vmem:[#allocation8 + $0x248] sm:$0xff] }
  0x5a   : > { %582 = vmatpush.msra.mxu1 %v432_v56  ;;  %560 = vmatpush.msra.mxu0 %v415_v58  ;;  %v504_v25 = vld [vmem:[#allocation8 + $0x2d0] sm:$0xff]  ;;  %v519_v26 = vld [vmem:[#allocation8 + $0x348] sm:$0xff]  ;;  %v486_v28 = vld [vmem:[#allocation8 + $0x240] sm:$0xff] }
  0x5b   : > { %628 = vmatpush.msra.mxu3 %v464_v57  ;;  %606 = vmatpush.msra.mxu2 %v447_v59  ;;  %v536_v27 = vld [vmem:[#allocation8 + $0x3d0] sm:$0xff]  ;;  %v503_v29 = vld [vmem:[#allocation8 + $0x2c8] sm:$0xff]  ;;  %v518_v30 = vld [vmem:[#allocation8 + $0x340] sm:$0xff] }
  0x5c   : > { %583 = vmatpush.msra.mxu1 %v431_v60  ;;  %561 = vmatpush.msra.mxu0 %v414_v62  ;;  %v535_v31 = vld [vmem:[#allocation8 + $0x3c8] sm:$0xff]  ;;  %v398_v32 = vld [vmem:[%s1624_s20] sm:$0xff]  ;;  %v400_v33 = vld [vmem:[%s1624_s20 + $0x10] sm:$0xff] }
  0x5d   : > { %629 = vmatpush.msra.mxu3 %v463_v61  ;;  %607 = vmatpush.msra.mxu2 %v446_v63  ;;  %v485_v34 = vld [vmem:[#allocation8 + $0x238] sm:$0xff]  ;;  %v502_v35 = vld [vmem:[#allocation8 + $0x2c0] sm:$0xff]  ;;  %v399_v38 = vld [vmem:[%s1624_s20 + $0x8] sm:$0xff] }
  0x5e   : > { %638 = vmatpush.msrb.mxu0 %v493_v0  ;;  %584 = vmatpush.msra.mxu1 %v430_v2  ;;  %v517_v36 = vld [vmem:[#allocation8 + $0x338] sm:$0xff]  ;;  %v534_v37 = vld [vmem:[#allocation8 + $0x3c0] sm:$0xff]  ;;  %v484_v40 = vld [vmem:[#allocation8 + $0x230] sm:$0xff] }
  0x5f   : > { %684 = vmatpush.msrb.mxu2 %v525_v1  ;;  %630 = vmatpush.msra.mxu3 %v462_v3  ;;  %v401_v39 = vld [vmem:[%s1624_s20 + $0x18] sm:$0xff]  ;;  %v516_v42 = vld [vmem:[#allocation8 + $0x330] sm:$0xff]  ;;  %v483_v44 = vld [vmem:[#allocation8 + $0x228] sm:$0xff] }
  0x60   : > { %639 = vmatpush.msrb.mxu0 %v492_v4  ;;  %661 = vmatpush.msrb.mxu1 %v509_v5  ;;  %v501_v41 = vld [vmem:[#allocation8 + $0x2b8] sm:$0xff]  ;;  %v500_v45 = vld [vmem:[#allocation8 + $0x2b0] sm:$0xff]  ;;  %v515_v46 = vld [vmem:[#allocation8 + $0x328] sm:$0xff] }
  0x61   : > { %685 = vmatpush.msrb.mxu2 %v524_v6  ;;  %707 = vmatpush.msrb.mxu3 %v541_v7  ;;  %v533_v43 = vld [vmem:[#allocation8 + $0x3b8] sm:$0xff]  ;;  %v532_v47 = vld [vmem:[#allocation8 + $0x3b0] sm:$0xff]  ;;  %v482_v48 = vld [vmem:[#allocation8 + $0x220] sm:$0xff] }
  0x62   : > { %640 = vmatpush.msrb.mxu0 %v491_v8  ;;  %662 = vmatpush.msrb.mxu1 %v508_v9  ;;  %v499_v49 = vld [vmem:[#allocation8 + $0x2a8] sm:$0xff]  ;;  %v514_v50 = vld [vmem:[#allocation8 + $0x320] sm:$0xff]  ;;  %v408_v53 = vld [vmem:[%s1624_s20 + $0x50] sm:$0xff] }
  0x63   : > { %686 = vmatpush.msrb.mxu2 %v523_v10  ;;  %708 = vmatpush.msrb.mxu3 %v540_v11  ;;  %v531_v51 = vld [vmem:[#allocation8 + $0x3a8] sm:$0xff]  ;;  %v406_v52 = vld [vmem:[%s1624_s20 + $0x40] sm:$0xff]  ;;  %v481_v54 = vld [vmem:[#allocation8 + $0x218] sm:$0xff] }
  0x64   : > { %641 = vmatpush.msrb.mxu0 %v490_v12  ;;  %663 = vmatpush.msrb.mxu1 %v507_v13  ;;  %v498_v55 = vld [vmem:[#allocation8 + $0x2a0] sm:$0xff]  ;;  %v513_v56 = vld [vmem:[#allocation8 + $0x318] sm:$0xff]  ;;  %v407_v58 = vld [vmem:[%s1624_s20 + $0x48] sm:$0xff] }
  0x65   : > { %687 = vmatpush.msrb.mxu2 %v522_v14  ;;  %709 = vmatpush.msrb.mxu3 %v539_v15  ;;  %v530_v57 = vld [vmem:[#allocation8 + $0x3a0] sm:$0xff]  ;;  %v409_v59 = vld [vmem:[%s1624_s20 + $0x58] sm:$0xff]  ;;  %v480_v60 = vld [vmem:[#allocation8 + $0x210] sm:$0xff] }
  0x66   : > { %642 = vmatpush.msrb.mxu0 %v489_v16  ;;  %664 = vmatpush.msrb.mxu1 %v506_v17  ;;  %v497_v61 = vld [vmem:[#allocation8 + $0x298] sm:$0xff]  ;;  %v512_v62 = vld [vmem:[#allocation8 + $0x310] sm:$0xff]  ;;  %v479_v0 = vld [vmem:[#allocation8 + $0x208] sm:$0xff] }
  0x67   : > { %688 = vmatpush.msrb.mxu2 %v521_v18  ;;  %710 = vmatpush.msrb.mxu3 %v538_v19  ;;  %v529_v63 = vld [vmem:[#allocation8 + $0x398] sm:$0xff]  ;;  %v496_v1 = vld [vmem:[#allocation8 + $0x290] sm:$0xff]  ;;  %v511_v2 = vld [vmem:[#allocation8 + $0x308] sm:$0xff] }
  0x68   : > { %643 = vmatpush.msrb.mxu0 %v488_v20  ;;  %665 = vmatpush.msrb.mxu1 %v505_v21  ;;  %v528_v3 = vld [vmem:[#allocation8 + $0x390] sm:$0xff]  ;;  %v478_v4 = vld [vmem:[#allocation8 + $0x200] sm:$0xff]  ;;  %v495_v5 = vld [vmem:[#allocation8 + $0x288] sm:$0xff] }
  0x69   : > { %689 = vmatpush.msrb.mxu2 %v520_v22  ;;  %711 = vmatpush.msrb.mxu3 %v537_v23  ;;  %v510_v6 = vld [vmem:[#allocation8 + $0x300] sm:$0xff]  ;;  %v527_v7 = vld [vmem:[#allocation8 + $0x388] sm:$0xff]  ;;  %v404_v9 = vld [vmem:[%s1624_s20 + $0x30] sm:$0xff] }
  0x6a   : > { %644 = vmatpush.msrb.mxu0 %v487_v24  ;;  %666 = vmatpush.msrb.mxu1 %v504_v25  ;;  %v402_v8 = vld [vmem:[%s1624_s20 + $0x20] sm:$0xff]  ;;  %v403_v12 = vld [vmem:[%s1624_s20 + $0x28] sm:$0xff]  ;;  %v405_v13 = vld [vmem:[%s1624_s20 + $0x38] sm:$0xff] }
  0x6b   : > { %690 = vmatpush.msrb.mxu2 %v519_v26  ;;  %712 = vmatpush.msrb.mxu3 %v536_v27  ;;  %v494_v10 = vld [vmem:[#allocation8 + $0x280] sm:$0xff]  ;;  %v745_v14 = vld [vmem:[#allocation10 + $0x78] sm:$0xff]  ;;  %v744_v15 = vld [vmem:[#allocation10 + $0x70] sm:$0xff] }
  0x6c   : > { %645 = vmatpush.msrb.mxu0 %v486_v28  ;;  %667 = vmatpush.msrb.mxu1 %v503_v29  ;;  %v526_v11 = vld [vmem:[#allocation8 + $0x380] sm:$0xff]  ;;  %v412_v17 = vld [vmem:[%s1624_s20 + $0x70] sm:$0xff]  ;;  %v411_v18 = vld [vmem:[%s1624_s20 + $0x68] sm:$0xff] }
  0x6d   : > { %691 = vmatpush.msrb.mxu2 %v518_v30  ;;  %713 = vmatpush.msrb.mxu3 %v535_v31  ;;  %v410_v16 = vld [vmem:[%s1624_s20 + $0x60] sm:$0xff]  ;;  %v413_v19 = vld [vmem:[%s1624_s20 + $0x78] sm:$0xff]  ;;  %v743_v20 = vld [vmem:[#allocation10 + $0x68] sm:$0xff] }
  0x6e   : > { %562 = vmatmul.f32.vlgmr.msra.gmra.mxu0 %v398_v32  ;;  %608 = vmatmul.f32.vlgmr.msra.gmra.mxu2 %v400_v33  ;;  %v742_v21 = vld [vmem:[#allocation10 + $0x60] sm:$0xff]  ;;  %v741_v22 = vld [vmem:[#allocation10 + $0x58] sm:$0xff]  ;;  %v740_v23 = vld [vmem:[#allocation10 + $0x50] sm:$0xff] }
  0x6f   : > { %646 = vmatpush.msrb.mxu0 %v485_v34  ;;  %668 = vmatpush.msrb.mxu1 %v502_v35  ;;  %v739_v24 = vld [vmem:[#allocation10 + $0x48] sm:$0xff]  ;;  %v738_v25 = vld [vmem:[#allocation10 + $0x40] sm:$0xff]  ;;  %v737_v26 = vld [vmem:[#allocation10 + $0x38] sm:$0xff] }
  0x70   : > { %692 = vmatpush.msrb.mxu2 %v517_v36  ;;  %714 = vmatpush.msrb.mxu3 %v534_v37  ;;  %v736_v27 = vld [vmem:[#allocation10 + $0x30] sm:$0xff]  ;;  %v735_v28 = vld [vmem:[#allocation10 + $0x28] sm:$0xff]  ;;  %v734_v29 = vld [vmem:[#allocation10 + $0x20] sm:$0xff] }
  0x71   : > { %585 = vmatmul.f32.vlgmr.msra.gmra.mxu1 %v399_v38  ;;  %631 = vmatmul.f32.vlgmr.msra.gmra.mxu3 %v401_v39  ;;  %v733_v30 = vld [vmem:[#allocation10 + $0x18] sm:$0xff]  ;;  %v732_v31 = vld [vmem:[#allocation10 + $0x10] sm:$0xff]  ;;  %v731_v32 = vld [vmem:[#allocation10 + $0x8] sm:$0xff] }
  0x72   : > { %647 = vmatpush.msrb.mxu0 %v484_v40  ;;  %669 = vmatpush.msrb.mxu1 %v501_v41  ;;  %v730_v33 = vld [vmem:[#allocation10] sm:$0xff]  ;;  %v1233_v35 = vld [vmem:[%s1707_s2] ss:$0 sm:$0xff] }
  0x73   : > { %693 = vmatpush.msrb.mxu2 %v516_v42  ;;  %715 = vmatpush.msrb.mxu3 %v533_v43 }
  0x74   : > { %648 = vmatpush.msrb.mxu0 %v483_v44  ;;  %670 = vmatpush.msrb.mxu1 %v500_v45 }
  0x75   : > { %694 = vmatpush.msrb.mxu2 %v515_v46  ;;  %716 = vmatpush.msrb.mxu3 %v532_v47 }
  0x76   : > { %649 = vmatpush.msrb.mxu0 %v482_v48  ;;  %671 = vmatpush.msrb.mxu1 %v499_v49 }
  0x77   : > { %695 = vmatpush.msrb.mxu2 %v514_v50  ;;  %717 = vmatpush.msrb.mxu3 %v531_v51 }
  0x78   : > { %565 = vmatmul.f32.gmra.mxu0 %v406_v52  ;;  %611 = vmatmul.f32.gmra.mxu2 %v408_v53 }
  0x79   : > { %650 = vmatpush.msrb.mxu0 %v481_v54  ;;  %672 = vmatpush.msrb.mxu1 %v498_v55 }
  0x7a   : > { %696 = vmatpush.msrb.mxu2 %v513_v56  ;;  %718 = vmatpush.msrb.mxu3 %v530_v57 }
  0x7b   : > { %588 = vmatmul.f32.gmra.mxu1 %v407_v58  ;;  %634 = vmatmul.f32.gmra.mxu3 %v409_v59 }
  0x7c   : > { %651 = vmatpush.msrb.mxu0 %v480_v60  ;;  %673 = vmatpush.msrb.mxu1 %v497_v61 }
  0x7d   : > { %697 = vmatpush.msrb.mxu2 %v512_v62  ;;  %719 = vmatpush.msrb.mxu3 %v529_v63 }
  0x7e   : > { %652 = vmatpush.msrb.mxu0 %v479_v0  ;;  %674 = vmatpush.msrb.mxu1 %v496_v1 }
  0x7f   : > { %698 = vmatpush.msrb.mxu2 %v511_v2  ;;  %720 = vmatpush.msrb.mxu3 %v528_v3  ;;  %v1234_v3 = vld [vmem:[%s1709_s4] ss:$0 sm:$0xff] }
  0x80   : > { %653 = vmatpush.msrb.mxu0 %v478_v4  ;;  %675 = vmatpush.msrb.mxu1 %v495_v5 }
  0x81   : > { %699 = vmatpush.msrb.mxu2 %v510_v6  ;;  %721 = vmatpush.msrb.mxu3 %v527_v7  ;;  %v1235_v6 = vld [vmem:[%s1710_s5] ss:$0 sm:$0xff] }
  0x82   : > { %654 = vmatmul.f32.vlgmr.msrb.gmra.mxu0 %v402_v8  ;;  %700 = vmatmul.f32.vlgmr.msrb.gmra.mxu2 %v404_v9 }
  0x83   : > { %676 = vmatpush.msrb.mxu1 %v494_v10  ;;  %722 = vmatpush.msrb.mxu3 %v526_v11 }
  0x84   : > { %677 = vmatmul.f32.vlgmr.msrb.gmra.mxu1 %v403_v12  ;;  %723 = vmatmul.f32.vlgmr.msrb.gmra.mxu3 %v405_v13  ;;  %v1476_v13 = vmov 0  }
  0x85   : > { %750 = vmatpush.msra.mxu0 %v745_v14  ;;  %1112 = vmatpush.msra.mxu1 %v745_v14 }
  0x86   : > { %1231 = vset.pattern.permute.xlu2 %v1476_v13  ;;  %1230 = vset.pattern.permute.xlu1 %v1476_v13 }
  0x87   : > { %751 = vmatpush.msra.mxu0 %v744_v15  ;;  %1113 = vmatpush.msra.mxu1 %v744_v15 }
  0x88   : > { %1232 = vset.pattern.permute.xlu0 %v1476_v13 }
  0x89   : > { %752 = vmatpush.msra.mxu0 %v743_v20  ;;  %1114 = vmatpush.msra.mxu1 %v743_v20 }
  0x8a   : > { %657 = vmatmul.f32.gmra.mxu0 %v410_v16  ;;  %703 = vmatmul.f32.gmra.mxu2 %v412_v17 }
  0x8b   : > { %753 = vmatpush.msra.mxu0 %v742_v21  ;;  %1115 = vmatpush.msra.mxu1 %v742_v21 }
  0x8c   : > { %680 = vmatmul.f32.gmra.mxu1 %v411_v18  ;;  %726 = vmatmul.f32.gmra.mxu3 %v413_v19 }
  0x8d   : > { %754 = vmatpush.msra.mxu0 %v741_v22  ;;  %1116 = vmatpush.msra.mxu1 %v741_v22  ;;  %v785_v22 = vld [vmem:[#allocation2] sm:$0x1] }
  0x8f   : > { %755 = vmatpush.msra.mxu0 %v740_v23  ;;  %1117 = vmatpush.msra.mxu1 %v740_v23 }
  0x91   : > { %756 = vmatpush.msra.mxu0 %v739_v24  ;;  %1118 = vmatpush.msra.mxu1 %v739_v24 }
  0x93   : > { %757 = vmatpush.msra.mxu0 %v738_v25  ;;  %1119 = vmatpush.msra.mxu1 %v738_v25 }
  0x95   : > { %758 = vmatpush.msra.mxu0 %v737_v26  ;;  %1120 = vmatpush.msra.mxu1 %v737_v26 }
  0x97   : > { %759 = vmatpush.msra.mxu0 %v736_v27  ;;  %1121 = vmatpush.msra.mxu1 %v736_v27 }
  0x99   : > { %760 = vmatpush.msra.mxu0 %v735_v28  ;;  %1122 = vmatpush.msra.mxu1 %v735_v28 }
  0x9b   : > { %761 = vmatpush.msra.mxu0 %v734_v29  ;;  %1123 = vmatpush.msra.mxu1 %v734_v29 }
  0x9d   : > { %762 = vmatpush.msra.mxu0 %v733_v30  ;;  %1124 = vmatpush.msra.mxu1 %v733_v30 }
  0x9f   : > { %763 = vmatpush.msra.mxu0 %v732_v31  ;;  %1125 = vmatpush.msra.mxu1 %v732_v31 }
  0xa1   : > { %764 = vmatpush.msra.mxu0 %v731_v32  ;;  %1126 = vmatpush.msra.mxu1 %v731_v32 }
  0xa3   : > { %765 = vmatpush.msra.mxu0 %v730_v33  ;;  %1127 = vmatpush.msra.mxu1 %v730_v33  ;;  %v786_v33 = vld [vmem:[#allocation2 + $0x1] sm:$0x1] }
  0xeb   : > { %v563_v34 = vpop.f32.mrf.mxu0 }
  0xec   : > { %v564_v38 = vadd.f32 %v1233_v35, %v563_v34 }
  0xee   : > { %v586_v36 = vpop.f32.mrf.mxu1 }
  0xef   : > { %v587_v41 = vadd.f32 %v586_v36, %v564_v38 }
  0xf1   : > { %v609_v37 = vpop.f32.mrf.mxu2 }
  0xf2   : > { %v610_v43 = vadd.f32 %v609_v37, %v587_v41 }
  0xf4   : > { %v632_v39 = vpop.f32.mrf.mxu3 }
  0xf5   : > { %v566_v40 = vpop.f32.mrf.mxu0  ;;  %v633_v46 = vadd.f32 %v632_v39, %v610_v43 }
  0xf6   : > { %v567_v44 = vadd.f32 %v1233_v35, %v566_v40 }
  0xf8   : > { %v589_v42 = vpop.f32.mrf.mxu1 }
  0xf9   : > { %v590_v47 = vadd.f32 %v589_v42, %v567_v44 }
  0xfb   : > { %v612_v45 = vpop.f32.mrf.mxu2 }
  0xfc   : > { %v613_v52 = vadd.f32 %v612_v45, %v590_v47 }
  0xfe   : > { %v635_v48 = vpop.f32.mrf.mxu3 }
  0xff   : > { %v655_v49 = vpop.f32.mrf.mxu0  ;;  %v636_v55 = vadd.f32 %v635_v48, %v613_v52  ;;  %v819_v52 = vld [vmem:[#allocation3] sm:$0x1] }
 0x100   : > { %v656_v50 = vadd.f32 %v655_v49, %v633_v46 }
 0x101   : > { %v678_v51 = vpop.f32.mrf.mxu1 }
 0x102   : > { %v679_v53 = vadd.f32 %v678_v51, %v656_v50 }
 0x105   : > { %v701_v54 = vpop.f32.mrf.mxu2 }
 0x106   : > { %v702_v56 = vadd.f32 %v701_v54, %v679_v53 }
 0x107   : > { %v658_v57 = vpop.f32.mrf.mxu0  ;;  %v724_v58 = vpop.f32.mrf.mxu3 }
 0x108   : > { %v659_v59 = vadd.f32 %v658_v57, %v636_v55  ;;  %v1658_v60 = vadd.f32 %v724_v58, %v702_v56 }
 0x109   : > { %v681_v61 = vpop.f32.mrf.mxu1 }
 0x10a   : > { %766 = vmatmul.f32.vlgmr.msra.gmra.mxu0 %v1658_v60  ;;  %v682_v62 = vadd.f32 %v681_v61, %v659_v59 }
 0x10d   : > { %v704_v63 = vpop.f32.mrf.mxu2 }
 0x10e   : > { %v705_v0 = vadd.f32 %v704_v63, %v682_v62  ;;  %v820_v62 = vld [vmem:[#allocation3 + $0x1] sm:$0x1] }
 0x10f   : > { %v727_v1 = vpop.f32.mrf.mxu3 }
 0x110   : > { %v1661_v2 = vadd.f32 %v727_v1, %v705_v0 }
 0x112   : > { %769 = vmatmul.f32.vlgmr.msra.gmra.mxu1 %v1661_v2 }
 0x187   : > { %v767_v4 = vpop.f32.mrf.mxu0 }
 0x188   : > { %v768_v5 = vadd.f32 %v1234_v3, %v767_v4 }
 0x18a   : > { %1236 = vtanh.f32 %v768_v5 }
 0x18f   : > { %v770_v7 = vpop.f32.mrf.mxu1 }
 0x190   : > { %v1237_v8 = vpop.eup %1236  ;;  %v771_v9 = vadd.f32 %v1234_v3, %v770_v7 }
 0x191   : > { %v779_v10 = vmul.f32 %v1237_v8, %v1235_v6 }
 0x192   : > { %1238 = vtanh.f32 %v771_v9 }
 0x193   : > { %781 = vadd.xlane.f32.xlu0 %v779_v10 }
 0x198   : > { %v1239_v11 = vpop.eup %1238 }
 0x199   : > { %v780_v12 = vmul.f32 %v1239_v11, %v1235_v6 }
 0x19b   : > { %783 = vadd.xlane.f32.xlu0 %v780_v12 }
 0x206   : > { %v782_v14 = vpop.xlane.xlu0 %781 }
 0x207   : > { %v787_v15 = vrot.slane %v782_v14, 4 }
 0x209   : > { %v788_v16 = vmax.f32 %v782_v14, %v787_v15 }
 0x20b   : > { %v789_v17 = vrot.slane %v788_v16, 2 }
 0x20d   : > { %v790_v18 = vmax.f32 %v788_v16, %v789_v17 }
 0x20e   : > { %v784_v19 = vpop.xlane.xlu0 %783 }
 0x20f   : > { %v791_v20 = vrot.slane %v790_v18, 1  ;;  %v793_v21 = vrot.slane %v784_v19, 4 }
 0x211   : > { %v792_v23 = vmax.f32 %v790_v18, %v791_v20  ;;  %v794_v24 = vmax.f32 %v784_v19, %v793_v21 }
 0x213   : > { %v799_v25 = vmax.f32 %v785_v22, %v792_v23  ;;  %v795_v26 = vrot.slane %v794_v24, 2 }
 0x215   : > { %v809_v27 = vperm.slane %v799_v25, 0  ;;  %887 = vst.msk [vmem:[#allocation2] sm:$0x1] %vm840_vm1, %v799_v25  ;;  %v796_v28 = vmax.f32 %v794_v24, %v795_v26  ;;  %v801_v29 = vsub.f32 %v785_v22, %v799_v25  ;;  %v844_v24 = vld [vmem:[#allocation4 + $0x1] sm:$0x1] }
 0x217   : > { %v813_v30 = vsub.f32 %v782_v14, %v809_v27  ;;  %v797_v31 = vrot.slane %v796_v28, 1  ;;  %v803_v32 = vmul.f32 1.442695, %v801_v29  ;;  %v843_v14 = vld [vmem:[#allocation4] sm:$0x1] }
 0x219   : > { %v815_v34 = vmul.f32 1.442695, %v813_v30  ;;  %v798_v35 = vmax.f32 %v796_v28, %v797_v31  ;;  %1240 = vpow2.f32 %v803_v32 }
 0x21b   : > { %1242 = vpow2.f32 %v815_v34  ;;  %v800_v36 = vmax.f32 %v786_v33, %v798_v35 }
 0x21d   : > { %v802_v37 = vsub.f32 %v786_v33, %v800_v36  ;;  %v810_v38 = vperm.slane %v800_v36, 0  ;;  %888 = vst.msk [vmem:[#allocation2 + $0x1] sm:$0x1] %vm840_vm1, %v800_v36 }
 0x21f   : > { %v1241_v39 = vpop.eup %1240  ;;  %v805_v40 = vmul.f32 1.442695, %v802_v37  ;;  %v814_v41 = vsub.f32 %v784_v19, %v810_v38 }
 0x220   : > { %847 = vperm.xlu2 %1231, %v1241_v39   ;;  %v821_v57 = vmul.f32 %v1241_v39, %v819_v52 }
 0x221   : > { %v1243_v42 = vpop.eup %1242  ;;  %1244 = vpow2.f32 %v805_v40  ;;  %v817_v43 = vmul.f32 1.442695, %v814_v41 }
 0x222   : > { %v824_v44 = vsel %vm823_vm2, %v1243_v42, 0.0  ;;  %861 = vperm.xlu1 %1230, %v1243_v42  }
 0x223   : > { %v825_v45 = vrot.slane %v824_v44, 4  ;;  %1246 = vpow2.f32 %v817_v43 }
 0x225   : > { %v826_v46 = vadd.f32 %v825_v45, %v824_v44 }
 0x227   : > { %v1245_v47 = vpop.eup %1244  ;;  %v827_v48 = vrot.slane %v826_v46, 2 }
 0x228   : > { %853 = vperm.xlu2 %1231, %v1245_v47   ;;  %v822_v0 = vmul.f32 %v1245_v47, %v820_v62 }
 0x229   : > { %v1247_v49 = vpop.eup %1246  ;;  %v828_v50 = vadd.f32 %v827_v48, %v826_v46 }
 0x22a   : > { %v831_v51 = vsel %vm823_vm2, %v1247_v49, 0.0  ;;  %866 = vperm.xlu1 %1230, %v1247_v49  }
 0x22b   : > { %v829_v53 = vrot.slane %v828_v50, 1  ;;  %v832_v54 = vrot.slane %v831_v51, 4 }
 0x22d   : > { %v830_v55 = vadd.f32 %v829_v53, %v828_v50  ;;  %v833_v56 = vadd.f32 %v832_v54, %v831_v51 }
 0x22f   : > { %v834_v58 = vrot.slane %v833_v56, 2  ;;  %v838_v59 = vadd.f32 %v830_v55, %v821_v57 }
 0x231   : > { %v835_v61 = vadd.f32 %v834_v58, %v833_v56  ;;  %841 = vst.msk [vmem:[#allocation3] sm:$0x1] %vm840_vm1, %v838_v59 }
 0x233   : > { %v836_v63 = vrot.slane %v835_v61, 1 }
 0x235   : > { %v837_v1 = vadd.f32 %v836_v63, %v835_v61 }
 0x237   : > { %v839_v3 = vadd.f32 %v837_v1, %v822_v0 }
 0x239   : > { %842 = vst.msk [vmem:[#allocation3 + $0x1] sm:$0x1] %vm840_vm1, %v839_v3 }
 0x27a   : > { %v848_v7 = vpop.permute.xlu2 %847 }
 0x27b   : > { %v850_v11 = vperm.slane %v848_v7, 0 }
 0x27d   : > { %v857_v17 = vmul.f32 %v850_v11, %v843_v14 }
 0x282   : > { %v854_v20 = vpop.permute.xlu2 %853 }
 0x283   : > { %v856_v23 = vperm.slane %v854_v20, 0 }
 0x285   : > { %v858_v26 = vmul.f32 %v856_v23, %v844_v24 }
 0x294   : > { %v862_v4 = vpop.permute.xlu1 %861 }
 0x295   : > { %v869_v5 = vmul.f32 %v862_v4, %v1658_v60 }
 0x297   : > { %v871_v6 = vrot.slane %v869_v5, 4 }
 0x299   : > { %v872_v8 = vadd.f32 %v871_v6, %v869_v5 }
 0x29b   : > { %v873_v9 = vrot.slane %v872_v8, 2 }
 0x29c   : > { %v867_v10 = vpop.permute.xlu1 %866 }
 0x29d   : > { %v874_v12 = vadd.f32 %v873_v9, %v872_v8  ;;  %v870_v13 = vmul.f32 %v867_v10, %v1661_v2 }
 0x29f   : > { %v875_v15 = vrot.slane %v874_v12, 1  ;;  %v877_v16 = vrot.slane %v870_v13, 4 }
 0x2a1   : > { %v876_v18 = vadd.f32 %v875_v15, %v874_v12  ;;  %v878_v19 = vadd.f32 %v877_v16, %v870_v13 }
 0x2a3   : > { %v883_v21 = vadd.f32 %v876_v18, %v857_v17  ;;  %v879_v22 = vrot.slane %v878_v19, 2 }
 0x2a5   : > { %885 = vst [vmem:[#allocation4] sm:$0x1] %v883_v21  ;;  %v880_v60 = vadd.f32 %v879_v22, %v878_v19 }
 0x2a7   : > { %v881_v25 = vrot.slane %v880_v60, 1 }
 0x2a9   : > { %v882_v27 = vadd.f32 %v881_v25, %v880_v60  ;;  %892 = sbr.rel (%p1106_p1) target bundleno = 969 (0x3c9), region = 76 }
 0x2ab   : > { %v884_v28 = vadd.f32 %v882_v27, %v858_v26 }
 0x2ad   : > { %886 = vst [vmem:[#allocation4 + $0x1] sm:$0x1] %v884_v28 }
 0x2ae   : > { %v895_v2 = vld [vmem:[#allocation3] sm:$0x1]  ;;  %v1477_v29 = vmov 0   ;;  %v896_v30 = vld [vmem:[#allocation3 + $0x1] sm:$0x1]  ;;  %v953_v32 = vld [vmem:[#allocation11 + $0x70] sm:$0xff] }
 0x2af   : > { %1248 = vset.pattern.permute.xlu0 %v1477_v29  ;;  %v954_v31 = vld [vmem:[#allocation11 + $0x78] sm:$0xff]  ;;  %v952_v33 = vld [vmem:[#allocation11 + $0x68] sm:$0xff]  ;;  %v951_v34 = vld [vmem:[#allocation11 + $0x60] sm:$0xff] }
 0x2b0   : > { %899 = vperm.xlu0 %1248, %v895_v2   ;;  %966 = vmatpush.msra.mxu0 %v954_v31  ;;  %v950_v35 = vld [vmem:[#allocation11 + $0x58] sm:$0xff]  ;;  %v949_v36 = vld [vmem:[#allocation11 + $0x50] sm:$0xff]  ;;  %v948_v37 = vld [vmem:[#allocation11 + $0x48] sm:$0xff] }
 0x2b1   : > { %v947_v38 = vld [vmem:[#allocation11 + $0x40] sm:$0xff]  ;;  %v946_v39 = vld [vmem:[#allocation11 + $0x38] sm:$0xff]  ;;  %v945_v40 = vld [vmem:[#allocation11 + $0x30] sm:$0xff] }
 0x2b2   : > { %967 = vmatpush.msra.mxu0 %v953_v32  ;;  %v944_v41 = vld [vmem:[#allocation11 + $0x28] sm:$0xff]  ;;  %v943_v42 = vld [vmem:[#allocation11 + $0x20] sm:$0xff]  ;;  %v942_v43 = vld [vmem:[#allocation11 + $0x18] sm:$0xff] }
 0x2b3   : > { %v941_v44 = vld [vmem:[#allocation11 + $0x10] sm:$0xff]  ;;  %v940_v46 = vld [vmem:[#allocation11 + $0x8] sm:$0xff]  ;;  %v939_v48 = vld [vmem:[#allocation11] sm:$0xff] }
 0x2b4   : > { %968 = vmatpush.msra.mxu0 %v952_v33  ;;  %v893_v59 = vld [vmem:[#allocation4] sm:$0x1]  ;;  %v894_v8 = vld [vmem:[#allocation4 + $0x1] sm:$0x1]  ;;  %v1249_v14 = vld [vmem:[%s1712_s7] ss:$0 sm:$0xff] }
 0x2b6   : > { %969 = vmatpush.msra.mxu0 %v951_v34 }
 0x2b8   : > { %905 = vperm.xlu0 %1248, %v896_v30   ;;  %970 = vmatpush.msra.mxu0 %v950_v35 }
 0x2ba   : > { %971 = vmatpush.msra.mxu0 %v949_v36 }
 0x2bc   : > { %972 = vmatpush.msra.mxu0 %v948_v37 }
 0x2be   : > { %973 = vmatpush.msra.mxu0 %v947_v38 }
 0x2c0   : > { %974 = vmatpush.msra.mxu0 %v946_v39 }
 0x2c2   : > { %975 = vmatpush.msra.mxu0 %v945_v40 }
 0x2c4   : > { %976 = vmatpush.msra.mxu0 %v944_v41 }
 0x2c6   : > { %977 = vmatpush.msra.mxu0 %v943_v42 }
 0x2c8   : > { %978 = vmatpush.msra.mxu0 %v942_v43 }
 0x2ca   : > { %979 = vmatpush.msra.mxu0 %v941_v44 }
 0x2cc   : > { %980 = vmatpush.msra.mxu0 %v940_v46 }
 0x2ce   : > { %981 = vmatpush.msra.mxu0 %v939_v48 }
 0x322   : > { %v900_v45 = vpop.permute.xlu0 %899 }
 0x323   : > { %v902_v47 = vperm.slane %v900_v45, 0 }
 0x325   : > { %1250 = vrcp.f32 %v902_v47  ;;  %v920_v54 = vand.u32 2147483648, %v902_v47  ;;  %v918_v56 = vand.u32 2147483647, %v902_v47  ;;  %vm914_vm4 = vweird.f32 %v902_v47 }
 0x327   : > { %v921_v61 = vor.u32 1.1754944e-38, %v920_v54  ;;  %vm919_vm6 = vcmp.eq.f32.partialorder %v918_v56, 8.507059e+37 }
 0x32a   : > { %v906_v49 = vpop.permute.xlu0 %905 }
 0x32b   : > { %v1251_v50 = vpop.eup %1250  ;;  %v908_v51 = vperm.slane %v906_v49, 0 }
 0x32c   : > { %v910_v52 = vmul.f32 %v1251_v50, %v902_v47  ;;  %vm915_vm3 = vweird.f32 %v1251_v50 }
 0x32d   : > { %1252 = vrcp.f32 %v908_v51  ;;  %vm916_vm5 = vmor %vm914_vm4, %vm915_vm3  ;;  %v935_v4 = vand.u32 2147483648, %v908_v51  ;;  %v933_v6 = vand.u32 2147483647, %v908_v51  ;;  %vm929_vm8 = vweird.f32 %v908_v51 }
 0x32e   : > { %v911_v53 = vsub.f32 1.0, %v910_v52 }
 0x32f   : > { %v936_v9 = vor.u32 1.1754944e-38, %v935_v4  ;;  %vm934_vm10 = vcmp.eq.f32.partialorder %v933_v6, 8.507059e+37 }
 0x330   : > { %v912_v55 = vmul.f32 %v1251_v50, %v911_v53 }
 0x332   : > { %v913_v57 = vadd.f32 %v1251_v50, %v912_v55 }
 0x333   : > { %v1253_v58 = vpop.eup %1252 }
 0x334   : > { %v917_v62 = vsel %vm916_vm5, %v1251_v50, %v913_v57  ;;  %v925_v63 = vmul.f32 %v1253_v58, %v908_v51  ;;  %vm930_vm7 = vweird.f32 %v1253_v58 }
 0x335   : > { %v922_v0 = vsel %vm919_vm6, %v921_v61, %v917_v62  ;;  %vm931_vm9 = vmor %vm929_vm8, %vm930_vm7 }
 0x336   : > { %v923_v1 = vmul.f32 %v922_v0, %v893_v59  ;;  %v926_v3 = vsub.f32 1.0, %v925_v63 }
 0x338   : > { %961 = vst [vmem:[#allocation1] ss:$9 sm:$0xff] %v923_v1  ;;  %v927_v5 = vmul.f32 %v1253_v58, %v926_v3 }
 0x33a   : > { %v928_v7 = vadd.f32 %v1253_v58, %v927_v5 }
 0x33c   : > { %v932_v10 = vsel %vm931_vm9, %v1253_v58, %v928_v7 }
 0x33d   : > { %v937_v11 = vsel %vm934_vm10, %v936_v9, %v932_v10 }
 0x33e   : > { %v938_v12 = vmul.f32 %v937_v11, %v894_v8 }
 0x340   : > { %963 = vst [vmem:[#allocation1 + $0x1] ss:$9 sm:$0xff] %v938_v12 }
 0x347   : > { %v964_v13 = vld [vmem:[#allocation1] sm:$0xff] }
 0x348   : > { %982 = vmatmul.f32.vlgmr.msra.gmra.mxu0 %v964_v13 }
 0x3c5   : > { %v983_v15 = vpop.f32.mrf.mxu0 }
 0x3c6   : > { %v984_v16 = vadd.f32 %v1249_v14, %v983_v15 }
 0x3c8   : > { %986 = vst [vmem:[#allocation13] sm:$0x3] %v984_v16 }
 0x3c9 PF: > { %s1726_s26 = sadd.s32 4294967295, %s1464_s10   ;;  %s997_s18 = sshll.u32 %s1713_s8, 4  ;;  %s998_s18 = int_to_ptr.hbm [resolvable:$true] %s997_s18 }
 0x3ca   : > { %p1167_p3 = scmp.eq.s32.totalorder %s1726_s26, 1  ;;  %s1478_s21 = smov [#allocation13]  }
 0x3cb   : > { %s995_s22 = sshll.u32 %s1478_s21, 4  ;;  %s996_s22 = int_to_ptr.vmem [resolvable:$true] %s995_s22 }
 0x3cc   : > { %1143 = dma.vmem_to_hbm [thread:$0]  (%p1167_p3), %s996_s22, 32, %s998_s18, [#allocation7]  }
 0x3cd   : > { %1439 = dma.done.wait (%p1167_p3), [#allocation7], 32  }
 0x3ce   : > { %1441 = vsyncadd (%p1167_p3), [#allocation7], 4294967264 }
 0x3cf PF: > { %s24_s10 = sadd.s32 1, %s1464_s10   ;;  %s1727_s27 = smov %s1448_s28 }
 0x3d0   : > { %p21_p4 = scmp.ge.s32.totalorder %s24_s10, 4   ;;  %s1728_s28 = smov %s1452_s29 }
 0x3d1   : > { %s1729_s29 = smov %s1612_s25  ;;  %s1730_s30 = smov %s1460_s9 }
 0x3d2   : > { %s1731_s9 = smov %s1733_s16  ;;  %23 = sbr.rel (!%p21_p4) target bundleno = 11 (0xb), region = 111 }
 0x3d7   :  { %1011 = vsyncpa [#allocation6], 1 }
 0x3d8   :  { %1013 = vsyncpa [#allocation6 + $0x1], 1 }
 0x3d9   :  { %1014 = vsyncpa [#allocation9], 1 }
 0x3da   :  { %1015 = vsyncpa [#allocation12], 1 }
 0x3db   :  { %1016 = vsyncpa [#allocation7], 1 }
 0x3dc   :  { %1018 = vsyncpa [#allocation7 + $0x1], 1 }

</bundles_post_ra>
